<compile_context>
chip_gen: v7x
topology: tpu7x:2x2x1
jax: 0.10.0
libtpu: 0.0.40
codegen_flags: <defaults>
</compile_context>

<pallas_src>
import numpy as np
import jax
import jax.numpy as jnp
from jax import lax
from jax.experimental import pallas as pl
from jax.experimental.pallas import tpu as pltpu


def _round_up(a, b):
    return ((a + b - 1) // b) * b


def _tile_params(M, N):
    """Generation-aware tile sizes + scoped VMEM limit (v7x: 64 MiB physical, v5e/v6e: 128)."""
    try:
        kind = jax.devices()[0].device_kind.lower()
    except Exception:
        kind = ""
    is_v7 = "v7" in kind
    tm_cap = 128 if is_v7 else 256
    tn_cap = 1024 if is_v7 else 2048
    TM = tm_cap if M > tm_cap else _round_up(max(M, 1), 8)
    TN = tn_cap if N > tn_cap else _round_up(max(N, 1), 128)
    vmem_limit = (40 if is_v7 else 96) * 1024 * 1024
    return TM, TN, vmem_limit


def _cross_conv_kernel(xt_ref, bt_ref, invnt_ref, cnt_ref,
                       xst_ref, bs_ref, xs_ref, w2t_ref,
                       out_ref, sum_acc, gx_acc):
    k = pl.program_id(1)

    @pl.when(k == 0)
    def _():
        sum_acc[...] = jnp.zeros_like(sum_acc)
        gx_acc[...] = jnp.zeros_like(gx_acc)

    xt = xt_ref[...]                      # [TM, F] unscaled target features (this row tile)
    xt_s = xt * invnt_ref[...]            # [TM, F] target features / ||x_t|| (tiny VALU work)

    # Cosine scores on the MXU: NN matmul against the pre-scaled, pre-transposed source block.
    cos = jnp.dot(xt_s, xst_ref[...], preferred_element_type=jnp.float32)   # [TM, TN]
    same = bt_ref[...] == bs_ref[...]                                        # [TM, TN] bool
    coef = jnp.where(same, jnp.maximum(cos, 0.0), 0.0)                       # relu(cos), edges only

    # Partial sums over this source tile (accumulated across the arbitrary axis).
    sum_acc[...] += jnp.sum(coef, axis=-1, keepdims=True)                    # [TM, 1]
    gx_acc[...] += jnp.dot(coef, xs_ref[...],
                           preferred_element_type=jnp.float32)               # [TM, F]

    @pl.when(k == pl.num_programs(1) - 1)
    def _():
        # PyG scatter-'add' of (coef + 1e-6): the +1e-6 contributes once per same-graph edge.
        coef_sum = sum_acc[...] + 1e-6 * cnt_ref[...]                        # [TM, 1]
        safe_sum = jnp.where(coef_sum > 0.0, coef_sum, 1.0)                  # isolated targets -> 0
        inv_sum = pl.reciprocal(safe_sum, approx=False)                      # exact divide, [TM,1]
        gx = gx_acc[...] * inv_sum                                           # [TM, F]

        # Weighted-cosine readout: three small dots against the resident [F, O_pad] RHS.
        w2t = w2t_ref[...]
        num = jnp.dot(xt * gx, w2t, preferred_element_type=jnp.float32)      # [TM, O_pad]
        dt = jnp.dot(xt * xt, w2t, preferred_element_type=jnp.float32)
        dg = jnp.dot(gx * gx, w2t, preferred_element_type=jnp.float32)
        out_ref[...] = num * lax.rsqrt(dt + 1e-6) * lax.rsqrt(dg + 1e-6)     # EUP rsqrt


def _cross_conv_pass(x_tgt, b_tgt, inv_n_tgt, cnt_tgt,
                     x_src, b_src, inv_n_src, w2t_pad):
    M, F = x_tgt.shape
    N = x_src.shape[0]
    O_pad = w2t_pad.shape[1]

    TM, TN, vmem_limit = _tile_params(M, N)
    M_pad = _round_up(M, TM)
    N_pad = _round_up(N, TN)

    pm = M_pad - M
    if pm:
        x_tgt = jnp.pad(x_tgt, ((0, pm), (0, 0)))
        b_tgt = jnp.pad(b_tgt, (0, pm), constant_values=-1)   # never matches a real graph id
        inv_n_tgt = jnp.pad(inv_n_tgt, (0, pm))
        cnt_tgt = jnp.pad(cnt_tgt, (0, pm))
    pn = N_pad - N
    if pn:
        x_src = jnp.pad(x_src, ((0, pn), (0, 0)))
        b_src = jnp.pad(b_src, (0, pn), constant_values=-2)   # matches neither targets nor pads
        inv_n_src = jnp.pad(inv_n_src, (0, pn))

    # Pre-scaled + pre-transposed sources for the score matmul (no in-kernel transpose, no
    # [TM,TN] norm multiplies).  Unscaled x_src feeds the aggregation matmul.
    xs_scaled_t = jnp.transpose(x_src * inv_n_src[:, None])   # [F, N_pad]

    bt2 = b_tgt.reshape(M_pad, 1)
    it2 = inv_n_tgt.reshape(M_pad, 1)
    ct2 = cnt_tgt.reshape(M_pad, 1)
    bs2 = b_src.reshape(1, N_pad)

    grid = (M_pad // TM, N_pad // TN)
    flops = int(4 * M_pad * N_pad * F + 4 * M_pad * N_pad + 6 * M_pad * F * O_pad)
    transcendentals = int(M_pad + 2 * M_pad * O_pad)
    bytes_accessed = int(4 * (2 * M_pad * F + 2 * N_pad * F + F * O_pad
                              + M_pad * O_pad + 3 * M_pad + 2 * N_pad))

    out = pl.pallas_call(
        _cross_conv_kernel,
        out_shape=jax.ShapeDtypeStruct((M_pad, O_pad), jnp.float32),
        grid_spec=pltpu.PrefetchScalarGridSpec(
            num_scalar_prefetch=0,
            grid=grid,
            in_specs=[
                pl.BlockSpec((TM, F), lambda i, k: (i, 0)),     # target features row tile
                pl.BlockSpec((TM, 1), lambda i, k: (i, 0)),     # target batch ids
                pl.BlockSpec((TM, 1), lambda i, k: (i, 0)),     # 1/||x_t||
                pl.BlockSpec((TM, 1), lambda i, k: (i, 0)),     # same-graph source count
                pl.BlockSpec((F, TN), lambda i, k: (0, k)),     # scaled+transposed source tile
                pl.BlockSpec((1, TN), lambda i, k: (0, k)),     # source batch ids tile
                pl.BlockSpec((TN, F), lambda i, k: (k, 0)),     # unscaled source tile (aggregation)
                # TODO(synk): pipeline_mode=pl.Buffered(1) on this constant-index RHS once
                # single-buffering resident blocks matters (it is only ~16 KiB double-buffered).
                pl.BlockSpec((F, O_pad), lambda i, k: (0, 0)),  # (weight**2).T, zero-padded lanes
            ],
            out_specs=pl.BlockSpec((TM, O_pad), lambda i, k: (i, 0)),
            scratch_shapes=[pltpu.VMEM((TM, 1), jnp.float32),   # coef_sum accumulator
                            pltpu.VMEM((TM, F), jnp.float32)],  # coef @ x_src accumulator
        ),
        compiler_params=pltpu.CompilerParams(
            dimension_semantics=("parallel", "arbitrary"),
            vmem_limit_bytes=vmem_limit,
        ),
        cost_estimate=pl.CostEstimate(
            flops=flops,
            transcendentals=transcendentals,
            bytes_accessed=bytes_accessed,
        ),
    )(x_tgt, bt2, it2, ct2, xs_scaled_t, bs2, x_src, w2t_pad)
    return out[:M]


def cross_graph_convolution(x_left, batch_left, x_right, batch_right, weight):
    xl = x_left.astype(jnp.float32)
    xr = x_right.astype(jnp.float32)
    bl = batch_left.astype(jnp.int32)
    br = batch_right.astype(jnp.int32)

    O, F = weight.shape
    O_pad = _round_up(O, 128)  # lane-dense output stores: pad the readout RHS to 128 lanes
    w2t = jnp.transpose(weight.astype(jnp.float32) ** 2)       # [F, O], layout work done once
    w2t_pad = jnp.pad(w2t, ((0, 0), (0, O_pad - O)))            # [F, O_pad]

    # Per-node inverse norms, computed once and shared by both directional passes.
    # NOTE: reference clamps the per-edge norm PRODUCT at 1e-6; we clamp per-node ||x||^2 at
    # 1e-12, which only diverges for degenerate near-zero-norm node pairs.
    inv_nl = lax.rsqrt(jnp.maximum(jnp.sum(xl * xl, axis=-1), 1e-12))
    inv_nr = lax.rsqrt(jnp.maximum(jnp.sum(xr * xr, axis=-1), 1e-12))

    # Same-graph source counts per target: O(M+N+G) per-graph bincount + gather (no MxN matrix).
    num_graphs = int(jnp.maximum(jnp.max(bl), jnp.max(br))) + 1
    per_graph_l = jnp.zeros((num_graphs,), jnp.float32).at[bl].add(1.0)
    per_graph_r = jnp.zeros((num_graphs,), jnp.float32).at[br].add(1.0)
    cnt_l = per_graph_r[bl]   # targets = left,  sources = right
    cnt_r = per_graph_l[br]   # targets = right, sources = left

    out1 = _cross_conv_pass(xl, bl, inv_nl, cnt_l, xr, br, inv_nr, w2t_pad)[:, :O]  # targets=left
    out2 = _cross_conv_pass(xr, br, inv_nr, cnt_r, xl, bl, inv_nl, w2t_pad)[:, :O]  # targets=right
    return out1, out2


# ---------------- host-side numpy reference (edge-list, mirrors PyG semantics) ----------------
def _ref_operator(x_src, x_tgt, b_src, b_tgt, w):
    mask = b_tgt[:, None] == b_src[None, :]
    tgt_idx, src_idx = np.nonzero(mask)
    x_i = x_tgt[tgt_idx]
    x_j = x_src[src_idx]
    x_i_norm = np.linalg.norm(x_i, axis=-1, keepdims=True)
    x_j_norm = np.linalg.norm(x_j, axis=-1, keepdims=True)
    x_norm = np.maximum(x_i_norm * x_j_norm, 1e-6)
    prod = np.sum(x_i * x_j, axis=1, keepdims=True)
    coef = np.maximum(prod / x_norm, 0.0)
    M = x_tgt.shape[0]
    coef_sum = np.zeros((M, 1), dtype=np.float64)
    np.add.at(coef_sum, tgt_idx, coef + 1e-6)
    norm_coef = coef / coef_sum[tgt_idx]
    msg = norm_coef * x_j
    g = np.zeros((M, x_src.shape[1]), dtype=np.float64)
    np.add.at(g, tgt_idx, msg)
    tw = x_tgt[:, None, :] * w[None, :, :]
    gw = g[:, None, :] * w[None, :, :]
    num = np.sum(tw * gw, axis=-1)
    dt = np.sqrt(np.sum(tw * tw, axis=-1) + 1e-6)
    dg = np.sqrt(np.sum(gw * gw, axis=-1) + 1e-6)
    return num / np.maximum(dt * dg, 1e-6)


if __name__ == "__main__":
    in_nhid, out_nhid = 32, 16
    n_left, n_right = 8, 8

    key = jax.random.PRNGKey(0)
    k_xl, k_xr, k_w = jax.random.split(key, 3)

    x_left = jax.random.normal(k_xl, (n_left, in_nhid), dtype=jnp.float32)
    x_right = jax.random.normal(k_xr, (n_right, in_nhid), dtype=jnp.float32)
    batch_left = jnp.array([0, 0, 0, 1, 1, 1, 1, 1], dtype=jnp.int32)
    batch_right = jnp.array([0, 0, 0, 0, 1, 1, 1, 1], dtype=jnp.int32)

    # deterministic xavier_uniform-style init for the [out_nhid, in_nhid] weight
    limit = float(np.sqrt(6.0 / (out_nhid + in_nhid)))
    weight = jax.random.uniform(k_w, (out_nhid, in_nhid), dtype=jnp.float32,
                                minval=-limit, maxval=limit)

    out1, out2 = cross_graph_convolution(x_left, batch_left, x_right, batch_right, weight)
    out1 = jax.block_until_ready(out1)
    out2 = jax.block_until_ready(out2)

    # reference check (mirrors PyTorch/PyG message-passing semantics on an edge list)
    xl_np = np.asarray(x_left, dtype=np.float64)
    xr_np = np.asarray(x_right, dtype=np.float64)
    bl_np = np.asarray(batch_left)
    br_np = np.asarray(batch_right)
    w_np = np.asarray(weight, dtype=np.float64)
    ref1 = _ref_operator(xr_np, xl_np, br_np, bl_np, w_np)  # targets = left
    ref2 = _ref_operator(xl_np, xr_np, bl_np, br_np, w_np)  # targets = right

    np.testing.assert_allclose(np.asarray(out1), ref1, rtol=1e-4, atol=1e-4)
    np.testing.assert_allclose(np.asarray(out2), ref2, rtol=1e-4, atol=1e-4)

    assert out1.shape == (n_left, out_nhid) and out2.shape == (n_right, out_nhid)
    print("KERNEL_OK")
</pallas_src>

<mosaic_0001>
module attributes {stable_mosaic.version = 11 : i64} {
  func.func @_cross_conv_kernel(%arg0: i32, %arg1: i32, %arg2: memref<8x32xf32, #tpu.memory_space<vmem>>, %arg3: memref<8x1xi32, #tpu.memory_space<vmem>>, %arg4: memref<8x1xf32, #tpu.memory_space<vmem>>, %arg5: memref<8x1xf32, #tpu.memory_space<vmem>>, %arg6: memref<32x128xf32, #tpu.memory_space<vmem>>, %arg7: memref<1x128xi32, #tpu.memory_space<vmem>>, %arg8: memref<128x32xf32, #tpu.memory_space<vmem>>, %arg9: memref<32x128xf32, #tpu.memory_space<vmem>>, %arg10: memref<8x128xf32, #tpu.memory_space<vmem>>, %arg11: memref<8x1xf32, #tpu.memory_space<vmem>>, %arg12: memref<8x32xf32, #tpu.memory_space<vmem>>) attributes {dimension_semantics = [#tpu.dimension_semantics<parallel>, #tpu.dimension_semantics<arbitrary>], iteration_bounds = array<i64: 1, 1>, scalar_prefetch = 0 : i64, scratch_operands = 2 : i64, tpu.core_type = #tpu.core_type<tc>, window_params = [{transform_indices = @transform_0, window_bounds = array<i64: 8, 32>}, {transform_indices = @transform_1, window_bounds = array<i64: 8, 1>}, {transform_indices = @transform_2, window_bounds = array<i64: 8, 1>}, {transform_indices = @transform_3, window_bounds = array<i64: 8, 1>}, {transform_indices = @transform_4, window_bounds = array<i64: 32, 128>}, {transform_indices = @transform_5, window_bounds = array<i64: 1, 128>}, {transform_indices = @transform_6, window_bounds = array<i64: 128, 32>}, {pipeline_mode = #tpu.pipeline_mode<synchronous>, transform_indices = @transform_7, window_bounds = array<i64: 32, 128>}, {transform_indices = @transform_8, window_bounds = array<i64: 8, 128>}]} {
    %c0_i32 = arith.constant 0 : i32
    %0 = arith.cmpi eq, %arg1, %c0_i32 : i32
    %1 = arith.extui %0 : i1 to i32
    %c0_i32_0 = arith.constant 0 : i32
    %2 = arith.cmpi ne, %1, %c0_i32_0 : i32
    scf.if %2 {
      %cst_26 = arith.constant 0.000000e+00 : f32
      %31 = vector.broadcast %cst_26 : f32 to vector<8x1xf32>
      %c0_27 = arith.constant 0 : index
      %c0_28 = arith.constant 0 : index
      %32 = vector.load %arg11[%c0_27, %c0_28] : memref<8x1xf32, #tpu.memory_space<vmem>>, vector<8x1xf32>
      tpu.vector_store %arg11[%c0_27, %c0_28], %31 {strides = array<i32>} : memref<8x1xf32, #tpu.memory_space<vmem>>, vector<8x1xf32>,
      %cst_29 = arith.constant 0.000000e+00 : f32
      %33 = vector.broadcast %cst_29 : f32 to vector<8x32xf32>
      %c0_30 = arith.constant 0 : index
      %c0_31 = arith.constant 0 : index
      %34 = vector.load %arg12[%c0_30, %c0_31] : memref<8x32xf32, #tpu.memory_space<vmem>>, vector<8x32xf32>
      tpu.vector_store %arg12[%c0_30, %c0_31], %33 {strides = array<i32>} : memref<8x32xf32, #tpu.memory_space<vmem>>, vector<8x32xf32>,
    } else {
    }
    %c0 = arith.constant 0 : index
    %c0_1 = arith.constant 0 : index
    %3 = vector.load %arg2[%c0, %c0_1] : memref<8x32xf32, #tpu.memory_space<vmem>>, vector<8x32xf32>
    %c0_2 = arith.constant 0 : index
    %c0_3 = arith.constant 0 : index
    %4 = vector.load %arg4[%c0_2, %c0_3] : memref<8x1xf32, #tpu.memory_space<vmem>>, vector<8x1xf32>
    %5 = vector.broadcast %4 : vector<8x1xf32> to vector<8x32xf32>
    %6 = arith.mulf %3, %5 : vector<8x32xf32>
    %c0_4 = arith.constant 0 : index
    %c0_5 = arith.constant 0 : index
    %7 = vector.load %arg6[%c0_4, %c0_5] : memref<32x128xf32, #tpu.memory_space<vmem>>, vector<32x128xf32>
    %cst = arith.constant dense<0.000000e+00> : vector<8x128xf32>
    %8 = tpu.matmul %6, %7, %cst {dimension_numbers = #tpu.dot_dimension_numbers<[1], [0], [0], [1], [0, 0, 1, 1], [], []>} : vector<8x32xf32>, vector<32x128xf32>, vector<8x128xf32> -> vector<8x128xf32>
    %c0_6 = arith.constant 0 : index
    %c0_7 = arith.constant 0 : index
    %9 = vector.load %arg3[%c0_6, %c0_7] : memref<8x1xi32, #tpu.memory_space<vmem>>, vector<8x1xi32>
    %c0_8 = arith.constant 0 : index
    %c0_9 = arith.constant 0 : index
    %10 = vector.load %arg7[%c0_8, %c0_9] : memref<1x128xi32, #tpu.memory_space<vmem>>, vector<1x128xi32>
    %11 = vector.broadcast %9 : vector<8x1xi32> to vector<8x128xi32>
    %12 = vector.broadcast %10 : vector<1x128xi32> to vector<8x128xi32>
    %13 = arith.cmpi eq, %11, %12 : vector<8x128xi32>
    %cst_10 = arith.constant 0.000000e+00 : f32
    %14 = vector.broadcast %cst_10 : f32 to vector<8x128xf32>
    %15 = arith.maximumf %8, %14 : vector<8x128xf32>
    %cst_11 = arith.constant 0.000000e+00 : f32
    %16 = vector.broadcast %cst_11 : f32 to vector<8x128xf32>
    %17 = arith.select %13, %15, %16 : vector<8x128xi1>, vector<8x128xf32>
    %c0_12 = arith.constant 0 : index
    %c0_13 = arith.constant 0 : index
    %18 = vector.load %arg11[%c0_12, %c0_13] : memref<8x1xf32, #tpu.memory_space<vmem>>, vector<8x1xf32>
    %cst_14 = arith.constant dense<0.000000e+00> : vector<8xf32>
    %19 = vector.multi_reduction <add>, %17, %cst_14 [1] : vector<8x128xf32> to vector<8xf32>
    %20 = vector.shape_cast %19 : vector<8xf32> to vector<8x1xf32>
    %21 = arith.addf %18, %20 : vector<8x1xf32>
    %c0_15 = arith.constant 0 : index
    %c0_16 = arith.constant 0 : index
    %22 = vector.load %arg11[%c0_15, %c0_16] : memref<8x1xf32, #tpu.memory_space<vmem>>, vector<8x1xf32>
    tpu.vector_store %arg11[%c0_15, %c0_16], %21 {strides = array<i32>} : memref<8x1xf32, #tpu.memory_space<vmem>>, vector<8x1xf32>,
    %c0_17 = arith.constant 0 : index
    %c0_18 = arith.constant 0 : index
    %23 = vector.load %arg12[%c0_17, %c0_18] : memref<8x32xf32, #tpu.memory_space<vmem>>, vector<8x32xf32>
    %c0_19 = arith.constant 0 : index
    %c0_20 = arith.constant 0 : index
    %24 = vector.load %arg8[%c0_19, %c0_20] : memref<128x32xf32, #tpu.memory_space<vmem>>, vector<128x32xf32>
    %cst_21 = arith.constant dense<0.000000e+00> : vector<8x32xf32>
    %25 = tpu.matmul %17, %24, %cst_21 {dimension_numbers = #tpu.dot_dimension_numbers<[1], [0], [0], [1], [0, 0, 1, 1], [], []>} : vector<8x128xf32>, vector<128x32xf32>, vector<8x32xf32> -> vector<8x32xf32>
    %26 = arith.addf %23, %25 : vector<8x32xf32>
    %c0_22 = arith.constant 0 : index
    %c0_23 = arith.constant 0 : index
    %27 = vector.load %arg12[%c0_22, %c0_23] : memref<8x32xf32, #tpu.memory_space<vmem>>, vector<8x32xf32>
    tpu.vector_store %arg12[%c0_22, %c0_23], %26 {strides = array<i32>} : memref<8x32xf32, #tpu.memory_space<vmem>>, vector<8x32xf32>,
    %c0_i32_24 = arith.constant 0 : i32
    %28 = arith.cmpi eq, %arg1, %c0_i32_24 : i32
    %29 = arith.extui %28 : i1 to i32
    %c0_i32_25 = arith.constant 0 : i32
    %30 = arith.cmpi ne, %29, %c0_i32_25 : i32
    scf.if %30 {
      %c0_26 = arith.constant 0 : index
      %c0_27 = arith.constant 0 : index
      %31 = vector.load %arg11[%c0_26, %c0_27] : memref<8x1xf32, #tpu.memory_space<vmem>>, vector<8x1xf32>
      %c0_28 = arith.constant 0 : index
      %c0_29 = arith.constant 0 : index
      %32 = vector.load %arg5[%c0_28, %c0_29] : memref<8x1xf32, #tpu.memory_space<vmem>>, vector<8x1xf32>
      %cst_30 = arith.constant 9.99999997E-7 : f32
      %33 = vector.broadcast %cst_30 : f32 to vector<8x1xf32>
      %34 = arith.mulf %33, %32 : vector<8x1xf32>
      %35 = arith.addf %31, %34 : vector<8x1xf32>
      %cst_31 = arith.constant 0.000000e+00 : f32
      %36 = vector.broadcast %cst_31 : f32 to vector<8x1xf32>
      %37 = arith.cmpf ogt, %35, %36 : vector<8x1xf32>
      %cst_32 = arith.constant 1.000000e+00 : f32
      %38 = vector.broadcast %cst_32 : f32 to vector<8x1xf32>
      %39 = arith.select %37, %35, %38 : vector<8x1xi1>, vector<8x1xf32>
      %40 = tpu.reciprocal %39 : vector<8x1xf32> -> vector<8x1xf32>
      %c0_33 = arith.constant 0 : index
      %c0_34 = arith.constant 0 : index
      %41 = vector.load %arg12[%c0_33, %c0_34] : memref<8x32xf32, #tpu.memory_space<vmem>>, vector<8x32xf32>
      %42 = vector.broadcast %40 : vector<8x1xf32> to vector<8x32xf32>
      %43 = arith.mulf %41, %42 : vector<8x32xf32>
      %c0_35 = arith.constant 0 : index
      %c0_36 = arith.constant 0 : index
      %44 = vector.load %arg9[%c0_35, %c0_36] : memref<32x128xf32, #tpu.memory_space<vmem>>, vector<32x128xf32>
      %45 = arith.mulf %3, %43 : vector<8x32xf32>
      %cst_37 = arith.constant dense<0.000000e+00> : vector<8x128xf32>
      %46 = tpu.matmul %45, %44, %cst_37 {dimension_numbers = #tpu.dot_dimension_numbers<[1], [0], [0], [1], [0, 0, 1, 1], [], []>} : vector<8x32xf32>, vector<32x128xf32>, vector<8x128xf32> -> vector<8x128xf32>
      %47 = arith.mulf %3, %3 : vector<8x32xf32>
      %cst_38 = arith.constant dense<0.000000e+00> : vector<8x128xf32>
      %48 = tpu.matmul %47, %44, %cst_38 {dimension_numbers = #tpu.dot_dimension_numbers<[1], [0], [0], [1], [0, 0, 1, 1], [], []>} : vector<8x32xf32>, vector<32x128xf32>, vector<8x128xf32> -> vector<8x128xf32>
      %49 = arith.mulf %43, %43 : vector<8x32xf32>
      %cst_39 = arith.constant dense<0.000000e+00> : vector<8x128xf32>
      %50 = tpu.matmul %49, %44, %cst_39 {dimension_numbers = #tpu.dot_dimension_numbers<[1], [0], [0], [1], [0, 0, 1, 1], [], []>} : vector<8x32xf32>, vector<32x128xf32>, vector<8x128xf32> -> vector<8x128xf32>
      %cst_40 = arith.constant 9.99999997E-7 : f32
      %51 = vector.broadcast %cst_40 : f32 to vector<8x128xf32>
      %52 = arith.addf %48, %51 : vector<8x128xf32>
      %53 = math.rsqrt %52 : vector<8x128xf32>
      %54 = arith.mulf %46, %53 : vector<8x128xf32>
      %cst_41 = arith.constant 9.99999997E-7 : f32
      %55 = vector.broadcast %cst_41 : f32 to vector<8x128xf32>
      %56 = arith.addf %50, %55 : vector<8x128xf32>
      %57 = math.rsqrt %56 : vector<8x128xf32>
      %58 = arith.mulf %54, %57 : vector<8x128xf32>
      %c0_42 = arith.constant 0 : index
      %c0_43 = arith.constant 0 : index
      %59 = vector.load %arg10[%c0_42, %c0_43] : memref<8x128xf32, #tpu.memory_space<vmem>>, vector<8x128xf32>
      tpu.vector_store %arg10[%c0_42, %c0_43], %58 {strides = array<i32>} : memref<8x128xf32, #tpu.memory_space<vmem>>, vector<8x128xf32>,
    } else {
    }
    return
  }
  func.func @transform_0(%arg0: i32, %arg1: i32) -> (i32, i32) {
    %c0_i32 = arith.constant 0 : i32
    %c0_i32_0 = arith.constant 0 : i32
    return %arg0, %c0_i32 : i32, i32
  }
  func.func @transform_1(%arg0: i32, %arg1: i32) -> (i32, i32) {
    %c0_i32 = arith.constant 0 : i32
    %c0_i32_0 = arith.constant 0 : i32
    return %arg0, %c0_i32 : i32, i32
  }
  func.func @transform_2(%arg0: i32, %arg1: i32) -> (i32, i32) {
    %c0_i32 = arith.constant 0 : i32
    %c0_i32_0 = arith.constant 0 : i32
    return %arg0, %c0_i32 : i32, i32
  }
  func.func @transform_3(%arg0: i32, %arg1: i32) -> (i32, i32) {
    %c0_i32 = arith.constant 0 : i32
    %c0_i32_0 = arith.constant 0 : i32
    return %arg0, %c0_i32 : i32, i32
  }
  func.func @transform_4(%arg0: i32, %arg1: i32) -> (i32, i32) {
    %c0_i32 = arith.constant 0 : i32
    %c0_i32_0 = arith.constant 0 : i32
    return %c0_i32, %arg1 : i32, i32
  }
  func.func @transform_5(%arg0: i32, %arg1: i32) -> (i32, i32) {
    %c0_i32 = arith.constant 0 : i32
    %c0_i32_0 = arith.constant 0 : i32
    return %c0_i32, %arg1 : i32, i32
  }
  func.func @transform_6(%arg0: i32, %arg1: i32) -> (i32, i32) {
    %c0_i32 = arith.constant 0 : i32
    %c0_i32_0 = arith.constant 0 : i32
    return %arg1, %c0_i32 : i32, i32
  }
  func.func @transform_7(%arg0: i32, %arg1: i32) -> (i32, i32) {
    %c0_i32 = arith.constant 0 : i32
    %c0_i32_0 = arith.constant 0 : i32
    %c0_i32_1 = arith.constant 0 : i32
    return %c0_i32, %c0_i32_0 : i32, i32
  }
  func.func @transform_8(%arg0: i32, %arg1: i32) -> (i32, i32) {
    %c0_i32 = arith.constant 0 : i32
    %c0_i32_0 = arith.constant 0 : i32
    return %arg0, %c0_i32 : i32, i32
  }
}

</mosaic_0001>

<bundles_post_ra>
// kernel: tpu_custom_call.1
= control target key start
LH: loop header
LB: loop body
LE: loop exit
PB: predicated region body
PF: predicated region fallthrough
CT: control target
= control target key end

     0   :  { %13 = vsyncpa [#allocation5], 0  ;;  %s1227_s0 = inlined_call_operand.hbm [shape: f32[8,32], index: 0, kind: input, shape index: {}]   ;;  %s1228_s1 = inlined_call_operand.hbm [shape: s32[8,1], index: 1, kind: input, shape index: {}]   ;;  %s1229_s2 = inlined_call_operand.hbm [shape: f32[8,1], index: 2, kind: input, shape index: {}]   ;;  %s1230_s3 = inlined_call_operand.hbm [shape: f32[8,1], index: 3, kind: input, shape index: {}]   ;;  %s1231_s4 = inlined_call_operand.hbm [shape: f32[32,128], index: 4, kind: input, shape index: {}]   ;;  %s1232_s5 = inlined_call_operand.hbm [shape: s32[1,128], index: 5, kind: input, shape index: {}]   ;;  %s1233_s6 = inlined_call_operand.hbm [shape: f32[128,32], index: 6, kind: input, shape index: {}]   ;;  %s1234_s7 = inlined_call_operand.hbm [shape: f32[32,128], index: 7, kind: input, shape index: {}]   ;;  %s1235_s8 = inlined_call_operand.hbm [shape: f32[8,128], index: 8, kind: output, shape index: {}]  }
   0x1   :  { %14 = vsyncpa [#allocation8], 0 }
   0x2   :  { %15 = vsyncpa [#allocation11], 0 }
   0x3   :  { %16 = vsyncpa [#allocation14], 0 }
   0x4   :  { %17 = vsyncpa [#allocation17], 0 }
   0x5   :  { %18 = vsyncpa [#allocation6], 0  ;;  %s1000_s27 = smov [#allocation7]   ;;  %s1001_s29 = smov [#allocation10]  }
   0x6   :  { %s35_s28 = sshll.u32 %s1000_s27, 4  ;;  %s55_s30 = sshll.u32 %s1001_s29, 4  ;;  %s36_s28 = int_to_ptr.vmem [resolvable:$true] %s35_s28  ;;  %s56_s30 = int_to_ptr.vmem [resolvable:$true] %s55_s30 }
   0x7   :  { %s790_s11 = scalar_lea.hbm %s1228_s1, 128 }
   0x8   :  { %p791_p0 = scmp.ne.s32.totalorder %s1228_s1, %s790_s11  ;;  %p794_p1 = scmp.lt.u32.totalorder %s790_s11, %s1228_s1 }
   0xa   :  { %p796_p2 = pnand %p794_p1, %p791_p0 }
   0xc   :  { %799 = shalt.err (!%p796_p2)
}
   0xd   :  { %s800_s16 = scalar_lea.vmem %s36_s28, 128  ;;  %p805_p4 = scmp.lt.s32.totalorder %s36_s28, %s36_s28 }
   0xe   :  { %p801_p3 = scmp.ne.s32.totalorder %s36_s28, %s800_s16  ;;  %p806_p5 = scmp.lt.s32.totalorder %s800_s16, %s800_s16 }
  0x10   :  { %p807_p6 = por %p806_p5, %p805_p4 }
  0x12   :  { %p808_p7 = pnand %p807_p6, %p801_p3 }
  0x14   :  { %811 = shalt.err (!%p808_p7)
}
  0x15   :  { %38 = dma.hbm_to_vmem [thread:$0]  %s1228_s1, 128, %s36_s28, [#allocation8]  }
  0x16   :  { %s812_s21 = scalar_lea.hbm %s1230_s3, 128 }
  0x17   :  { %p813_p8 = scmp.ne.s32.totalorder %s1230_s3, %s812_s21  ;;  %p816_p9 = scmp.lt.u32.totalorder %s812_s21, %s1230_s3 }
  0x19   :  { %p818_p10 = pnand %p816_p9, %p813_p8 }
  0x1b   :  { %821 = shalt.err (!%p818_p10)
}
  0x1c   :  { %s822_s26 = scalar_lea.vmem %s56_s30, 128  ;;  %p827_p12 = scmp.lt.s32.totalorder %s56_s30, %s56_s30 }
  0x1d   :  { %p823_p11 = scmp.ne.s32.totalorder %s56_s30, %s822_s26  ;;  %p828_p13 = scmp.lt.s32.totalorder %s822_s26, %s822_s26 }
  0x1f   :  { %p829_p0 = por %p828_p13, %p827_p12 }
  0x21   :  { %p830_p1 = pnand %p829_p0, %p823_p11 }
  0x23   :  { %833 = shalt.err (!%p830_p1)
}
  0x24   :  { %58 = dma.hbm_to_vmem [thread:$0]  %s1230_s3, 128, %s56_s30, [#allocation11]  }
  0x25   :  { %s1002_s28 = smov [#allocation13]   ;;  %s1003_s9 = smov [#allocation4]  }
  0x26   :  { %s77_s29 = sshll.u32 %s1002_s28, 4  ;;  %s25_s10 = sshll.u32 %s1003_s9, 4  ;;  %s78_s29 = int_to_ptr.vmem [resolvable:$true] %s77_s29  ;;  %s26_s10 = int_to_ptr.vmem [resolvable:$true] %s25_s10 }
  0x27   :  { %s834_s13 = scalar_lea.hbm %s1232_s5, 16 }
  0x28   :  { %p835_p2 = scmp.ne.s32.totalorder %s1232_s5, %s834_s13  ;;  %p838_p3 = scmp.lt.u32.totalorder %s834_s13, %s1232_s5 }
  0x2a   :  { %p840_p4 = pnand %p838_p3, %p835_p2 }
  0x2c   :  { %843 = shalt.err (!%p840_p4)
}
  0x2d   :  { %s844_s3 = scalar_lea.vmem %s78_s29, 16  ;;  %s848_s30 = scalar_lea.vmem %s78_s29, 32 }
  0x2e   :  { %p845_p5 = scmp.ne.s32.totalorder %s78_s29, %s844_s3  ;;  %p849_p6 = scmp.lt.s32.totalorder %s78_s29, %s78_s29 }
  0x2f   :  { %p850_p7 = scmp.lt.s32.totalorder %s848_s30, %s844_s3 }
  0x31   :  { %p851_p8 = por %p850_p7, %p849_p6 }
  0x33   :  { %p852_p9 = pnand %p851_p8, %p845_p5 }
  0x35   :  { %855 = shalt.err (!%p852_p9)
}
  0x36   :  { %80 = dma.hbm_to_vmem [thread:$0]  %s1232_s5, 16, %s78_s29, [#allocation14]  }
  0x37   :  { %s856_s22 = scalar_lea.hbm %s1227_s0, 128 }
  0x38   :  { %p857_p10 = scmp.ne.s32.totalorder %s1227_s0, %s856_s22  ;;  %p860_p11 = scmp.lt.u32.totalorder %s856_s22, %s1227_s0 }
  0x3a   :  { %p862_p12 = pnand %p860_p11, %p857_p10 }
  0x3c   :  { %865 = shalt.err (!%p862_p12)
}
  0x3d   :  { %s866_s1 = scalar_lea.vmem %s26_s10, 128  ;;  %p871_p0 = scmp.lt.s32.totalorder %s26_s10, %s26_s10 }
  0x3e   :  { %p867_p13 = scmp.ne.s32.totalorder %s26_s10, %s866_s1  ;;  %p872_p1 = scmp.lt.s32.totalorder %s866_s1, %s866_s1 }
  0x40   :  { %p873_p2 = por %p872_p1, %p871_p0 }
  0x42   :  { %p874_p3 = pnand %p873_p2, %p867_p13 }
  0x44   :  { %877 = shalt.err (!%p874_p3)
}
  0x45   :  { %28 = dma.hbm_to_vmem [thread:$0]  %s1227_s0, 128, %s26_s10, [#allocation5]  }
  0x46   :  { %s1004_s28 = smov [#allocation9]   ;;  %s1005_s9 = smov [#allocation12]  }
  0x47   :  { %s45_s29 = sshll.u32 %s1004_s28, 4  ;;  %s64_s11 = sshll.u32 %s1005_s9, 4  ;;  %s46_s29 = int_to_ptr.vmem [resolvable:$true] %s45_s29  ;;  %s1108_s11 = int_to_ptr.vmem [resolvable:$true] %s64_s11 }
  0x48   :  { %s878_s14 = scalar_lea.hbm %s1229_s2, 128 }
  0x49   :  { %p879_p4 = scmp.ne.s32.totalorder %s1229_s2, %s878_s14  ;;  %p882_p5 = scmp.lt.u32.totalorder %s878_s14, %s1229_s2 }
  0x4b   :  { %p884_p6 = pnand %p882_p5, %p879_p4 }
  0x4d   :  { %887 = shalt.err (!%p884_p6)
}
  0x4e   :  { %s888_s0 = scalar_lea.vmem %s46_s29, 128  ;;  %p893_p8 = scmp.lt.s32.totalorder %s46_s29, %s46_s29 }
  0x4f   :  { %p889_p7 = scmp.ne.s32.totalorder %s46_s29, %s888_s0  ;;  %p894_p9 = scmp.lt.s32.totalorder %s888_s0, %s888_s0 }
  0x51   :  { %p895_p10 = por %p894_p9, %p893_p8 }
  0x53   :  { %p896_p11 = pnand %p895_p10, %p889_p7 }
  0x55   :  { %899 = shalt.err (!%p896_p11)
}
  0x56   :  { %48 = dma.hbm_to_vmem [thread:$0]  %s1229_s2, 128, %s46_s29, [#allocation8]  }
  0x57   :  { %s900_s20 = scalar_lea.hbm %s1231_s4, 512 }
  0x58   :  { %p901_p12 = scmp.ne.s32.totalorder %s1231_s4, %s900_s20  ;;  %p904_p13 = scmp.lt.u32.totalorder %s900_s20, %s1231_s4 }
  0x5a   :  { %p906_p0 = pnand %p904_p13, %p901_p12 }
  0x5c   :  { %909 = shalt.err (!%p906_p0)
}
  0x5d   :  { %s910_s25 = scalar_lea.vmem %s1108_s11, 512  ;;  %p915_p2 = scmp.lt.s32.totalorder %s1108_s11, %s1108_s11 }
  0x5e   :  { %p911_p1 = scmp.ne.s32.totalorder %s1108_s11, %s910_s25  ;;  %p916_p3 = scmp.lt.s32.totalorder %s910_s25, %s910_s25 }
  0x60   :  { %p917_p4 = por %p916_p3, %p915_p2 }
  0x62   :  { %p918_p5 = pnand %p917_p4, %p911_p1 }
  0x64   :  { %921 = shalt.err (!%p918_p5)
}
  0x65   :  { %s1006_s2 = smov 128   ;;  %s1007_s26 = smov 8  }
  0x66   :  { %70 = dma.hbm_to_vmem [thread:$0]  %s1231_s4, 512, %s1108_s11, [#allocation11], %s1006_s2, %s1006_s2, %s1007_s26  }
  0x67   :  { %s1008_s27 = smov [#allocation15]   ;;  %s1009_s29 = smov [#allocation16]  }
  0x68   :  { %s86_s28 = sshll.u32 %s1008_s27, 4  ;;  %s98_s9 = sshll.u32 %s1009_s29, 4  ;;  %s87_s28 = int_to_ptr.vmem [resolvable:$true] %s86_s28  ;;  %s1142_s9 = int_to_ptr.vmem [resolvable:$true] %s98_s9 }
  0x69   :  { %s922_s14 = scalar_lea.hbm %s1233_s6, 2048 }
  0x6a   :  { %p923_p6 = scmp.ne.s32.totalorder %s1233_s6, %s922_s14  ;;  %p926_p7 = scmp.lt.u32.totalorder %s922_s14, %s1233_s6 }
  0x6c   :  { %p928_p8 = pnand %p926_p7, %p923_p6 }
  0x6e   :  { %931 = shalt.err (!%p928_p8)
}
  0x6f   :  { %s932_s4 = scalar_lea.vmem %s87_s28, 2048  ;;  %p937_p10 = scmp.lt.s32.totalorder %s87_s28, %s87_s28 }
  0x70   :  { %p933_p9 = scmp.ne.s32.totalorder %s87_s28, %s932_s4  ;;  %p938_p11 = scmp.lt.s32.totalorder %s932_s4, %s932_s4 }
  0x72   :  { %p939_p12 = por %p938_p11, %p937_p10 }
  0x74   :  { %p940_p13 = pnand %p939_p12, %p933_p9 }
  0x76   :  { %943 = shalt.err (!%p940_p13)
}
  0x77   :  { %92 = dma.hbm_to_vmem [thread:$0]  %s1233_s6, 2048, %s87_s28, [#allocation14], %s1006_s2, %s1006_s2, %s1007_s26  }
  0x78   :  { %s944_s18 = scalar_lea.hbm %s1234_s7, 512 }
  0x79   :  { %p945_p0 = scmp.ne.s32.totalorder %s1234_s7, %s944_s18  ;;  %p948_p1 = scmp.lt.u32.totalorder %s944_s18, %s1234_s7 }
  0x7b   :  { %p950_p2 = pnand %p948_p1, %p945_p0 }
  0x7d   :  { %953 = shalt.err (!%p950_p2)
}
  0x7e   :  { %s954_s23 = scalar_lea.vmem %s1142_s9, 512  ;;  %p959_p4 = scmp.lt.s32.totalorder %s1142_s9, %s1142_s9 }
  0x7f   :  { %p955_p3 = scmp.ne.s32.totalorder %s1142_s9, %s954_s23  ;;  %p960_p5 = scmp.lt.s32.totalorder %s954_s23, %s954_s23 }
  0x81   :  { %p961_p6 = por %p960_p5, %p959_p4 }
  0x83   :  { %p962_p7 = pnand %p961_p6, %p955_p3 }
  0x85   :  { %965 = shalt.err (!%p962_p7)
}
  0x86   :  { %104 = dma.hbm_to_vmem [thread:$0]  %s1234_s7, 512, %s1142_s9, [#allocation17], %s1006_s2, %s1006_s2, %s1007_s26  }
  0x87   :  { %988 = dma.done.wait [#allocation5], 128  }
  0x88   :  { %989 = vsyncadd [#allocation5], 4294967168 }
  0x89   :  { %990 = dma.done.wait [#allocation8], 256  }
  0x8a   :  { %991 = vsyncadd [#allocation8], 4294967040 }
  0x8b   :  { %992 = dma.done.wait [#allocation11], 640  }
  0x8c   :  { %993 = vsyncadd [#allocation11], 4294966656 }
  0x8d   :  { %994 = dma.done.wait [#allocation14], 2064  }
  0x8e   :  { %995 = vsyncadd [#allocation14], 4294965232 }
  0x8f   :  { %996 = dma.done.wait [#allocation17], 512  }
  0x90   :  { %997 = vsyncadd [#allocation17], 4294966784  ;;  %v1010_v0 = vmov 0   ;;  %v1011_v1 = vmov 0.0|0.0   ;;  %v138_v2 = vld [vmem:[#allocation9] sm:$0xff]  ;;  %v145_v3 = vld [vmem:[#allocation12] sm:$0xff] }
  0x91   :  { %782 = vset.pattern.permute.xlu0 %v1010_v0  ;;  %719 = vmatprep.subr.bf16.mxu0 %v1011_v1  ;;  %v146_v4 = vld [vmem:[#allocation12 + $0x8] sm:$0xff]  ;;  %v147_v5 = vld [vmem:[#allocation12 + $0x10] sm:$0xff]  ;;  %v148_v6 = vld [vmem:[#allocation12 + $0x18] sm:$0xff]  ;;  %vm135_vm0 = vcmask 261120   ;;  %vm1012_vm1 = vmmov 0   ;;  %v1013_v9 = vmov 0.0  }
  0x92   :  { %725 = vmatprep.subr.bf16.mxu1 %v1011_v1  ;;  %783 = vset.pattern.permute.xlu1 %v1010_v0  ;;  %v223_v7 = vld [vmem:[#allocation7] sm:$0xff]  ;;  %v720_v8 = vpack.c.bf16 %v146_v4, %v145_v3  ;;  %136 = vst.msk [vmem:[#allocation3] sm:$0xff] %vm135_vm0, %v1013_v9  ;;  %v723_v10 = vpack.c.bf16 %v148_v6, %v147_v5  ;;  %v244_v13 = vld [vmem:[#allocation15 + $0x10] sm:$0xff]  ;;  %v245_v15 = vld [vmem:[#allocation15 + $0x18] sm:$0xff]  ;;  %vm133_vm2 = vcmask 7168   ;;  %s1014_s7 = smov [#allocation18]  }
  0x93   :  { %141 = vperm.xlu0 %782, %v138_v2   ;;  %648 = vmatprep.mubr.msk.f32.mxu0 %vm1012_vm1, %v1013_v9  ;;  %v242_v11 = vld [vmem:[#allocation15] sm:$0xff]  ;;  %v243_v12 = vld [vmem:[#allocation15 + $0x8] sm:$0xff]  ;;  %v729_v16 = vpack.c.bf16 %v245_v15, %v244_v13  ;;  %v248_v20 = vld [vmem:[#allocation15 + $0x30] sm:$0xff]  ;;  %134 = vst.msk [vmem:[#allocation2] sm:$0xff] %vm133_vm2, %v1013_v9  ;;  %s584_s25 = sshll.u32 %s1014_s7, 4  ;;  %s585_s25 = int_to_ptr.vmem [resolvable:$true] %s584_s25 }
  0x94   :  { %683 = vmatprep.mubr.msk.f32.mxu1 %vm1012_vm1, %v1013_v9  ;;  %721 = vmatpush3.bf16.msra.mxu0 %v720_v8  ;;  %v726_v14 = vpack.c.bf16 %v243_v12, %v242_v11  ;;  %v246_v17 = vld [vmem:[#allocation15 + $0x20] sm:$0xff]  ;;  %v247_v18 = vld [vmem:[#allocation15 + $0x28] sm:$0xff]  ;;  %v249_v21 = vld [vmem:[#allocation15 + $0x38] sm:$0xff]  ;;  %s966_s2 = scalar_lea.vmem %s585_s25, 128  ;;  %p971_p9 = scmp.lt.s32.totalorder %s585_s25, %s585_s25 }
  0x95   :  { %722 = vmatprep.subr.bf16.mxu0 %v1011_v1  ;;  %v732_v19 = vpack.c.bf16 %v247_v18, %v246_v17  ;;  %v735_v22 = vpack.c.bf16 %v249_v21, %v248_v20  ;;  %v250_v23 = vld [vmem:[#allocation15 + $0x40] sm:$0xff]  ;;  %v251_v24 = vld [vmem:[#allocation15 + $0x48] sm:$0xff]  ;;  %v252_v26 = vld [vmem:[#allocation15 + $0x50] sm:$0xff]  ;;  %p967_p8 = scmp.ne.s32.totalorder %s585_s25, %s966_s2  ;;  %p972_p10 = scmp.lt.s32.totalorder %s966_s2, %s966_s2 }
  0x96   :  { %727 = vmatpush3.bf16.msra.mxu1 %v726_v14  ;;  %v738_v25 = vpack.c.bf16 %v251_v24, %v250_v23  ;;  %v253_v27 = vld [vmem:[#allocation15 + $0x58] sm:$0xff]  ;;  %v254_v29 = vld [vmem:[#allocation15 + $0x60] sm:$0xff]  ;;  %v255_v30 = vld [vmem:[#allocation15 + $0x68] sm:$0xff] }
  0x97   :  { %226 = vperm.xlu0 %782, %v223_v7   ;;  %728 = vmatprep.subr.bf16.mxu1 %v1011_v1  ;;  %v741_v28 = vpack.c.bf16 %v253_v27, %v252_v26  ;;  %v744_v31 = vpack.c.bf16 %v255_v30, %v254_v29  ;;  %v137_v32 = vld [vmem:[#allocation4] sm:$0xff]  ;;  %v256_v35 = vld [vmem:[#allocation15 + $0x70] sm:$0xff]  ;;  %v348_v45 = vld [vmem:[#allocation16 + $0x8] sm:$0xff]  ;;  %p973_p11 = por %p972_p10, %p971_p9 }
  0x98   :  { %724 = vmatpush3.bf16.msra.mxu0 %v723_v10  ;;  %v257_v36 = vld [vmem:[#allocation15 + $0x78] sm:$0xff]  ;;  %v347_v44 = vld [vmem:[#allocation16] sm:$0xff]  ;;  %v349_v55 = vld [vmem:[#allocation16 + $0x10] sm:$0xff]  ;;  %v425_v4 = vmul.f32 %v137_v32, %v137_v32 }
  0x99   :  { %749 = vmatprep.subr.bf16.mxu0 %v1011_v1  ;;  %v747_v37 = vpack.c.bf16 %v257_v36, %v256_v35  ;;  %v598_v38 = vld [vmem:[#allocation13] ss:$0 sm:$0xff]  ;;  %v750_v46 = vpack.c.bf16 %v348_v45, %v347_v44  ;;  %v334_v50 = vld [vmem:[#allocation10] sm:$0xff]  ;;  %p974_p12 = pnand %p973_p11, %p967_p8 }
  0x9a   :  { %730 = vmatpush3.bf16.msra.mxu1 %v729_v16  ;;  %v235_v47 = vld [vmem:[#allocation2] sm:$0xff]  ;;  %v335_v51 = vmul.f32 1e-06, %v334_v50  ;;  %v350_v56 = vld [vmem:[#allocation16 + $0x18] sm:$0xff] }
  0x9b   :  { %731 = vmatprep.subr.bf16.mxu1 %v1011_v1  ;;  %v753_v57 = vpack.c.bf16 %v350_v56, %v349_v55  ;;  %v241_v59 = vld [vmem:[#allocation3] sm:$0xff] }
  0x9e   :  { %733 = vmatpush3.bf16.msra.mxu1 %v732_v19 }
  0x9f   :  { %734 = vmatprep.subr.bf16.mxu1 %v1011_v1 }
  0xa2   :  { %736 = vmatpush3.bf16.msra.mxu1 %v735_v22 }
  0xa3   :  { %737 = vmatprep.subr.bf16.mxu1 %v1011_v1 }
  0xa6   :  { %739 = vmatpush3.bf16.msra.mxu1 %v738_v25 }
  0xa7   :  { %740 = vmatprep.subr.bf16.mxu1 %v1011_v1 }
  0xaa   :  { %742 = vmatpush3.bf16.msra.mxu1 %v741_v28 }
  0xab   :  { %743 = vmatprep.subr.bf16.mxu1 %v1011_v1 }
  0xae   :  { %745 = vmatpush3.bf16.msra.mxu1 %v744_v31 }
  0xaf   :  { %746 = vmatprep.subr.bf16.mxu1 %v1011_v1 }
  0xb2   :  { %748 = vmatpush3.bf16.msra.mxu1 %v747_v37 }
 0x112   :  { %v142_v33 = vpop.permute.xlu0 %141 }
 0x113   :  { %v144_v34 = vmul.f32 %v142_v33, %v137_v32 }
 0x115   :  { %649 = vmatmul.mubr.msk.f32.vlgmr.msra.gmra.mrb[0].mxu0 %vm135_vm0, %v144_v34 }
 0x116   :  { %694 = vmatprep.mubr.msk.f32.mxu0 %vm1012_vm1, %v1013_v9  ;;  %v227_v39 = vpop.permute.xlu0 %226  ;;  %751 = vmatpush3.bf16.msra.mxu0 %v750_v46 }
 0x117   :  { %vm232_vm3 = vcmp.eq.s32.totalorder %v227_v39, %v598_v38  ;;  %752 = vmatprep.subr.bf16.mxu0 %v1011_v1 }
 0x11a   :  { %754 = vmatpush3.bf16.msra.mxu0 %v753_v57 }
 0x11b   :  { %755 = vmatprep.subr.bf16.mxu0 %v1011_v1 }
 0x1e8   :  { %v219_v40 = vpop.f32.mrb[0].mxu0 }
 0x1e9   :  { %v233_v41 = vmax.f32 %v219_v40, 0.0  ;;  %v650_v42 = vpop.f32.mrb[1].mxu0 }
 0x1eb   :  { %684 = vmatmul.mubr.msk.f32.vlgmr.msra.gmra.mrb[0].mxu1 %vm232_vm3, %v233_v41  ;;  %v234_v43 = vsel %vm232_vm3, %v233_v41, 0.0 }
 0x1ec   :  { %236 = vadd.xlane.f32.xlu1 %v234_v43 }
 0x279   :  { %v237_v48 = vpop.xlane.xlu1 %236 }
 0x27a   :  { %v238_v49 = vadd.f32 %v237_v48, %v235_v47 }
 0x27c   :  { %240 = vst.msk [vmem:[#allocation2] sm:$0xff] %vm133_vm2, %v238_v49 }
 0x283   :  { %v333_v52 = vld [vmem:[#allocation2] sm:$0xff] }
 0x284   :  { %v336_v53 = vadd.f32 %v335_v51, %v333_v52 }
 0x286   :  { %vm337_vm4 = vcmp.gt.f32.partialorder %v336_v53, 0.0 }
 0x287   :  { %v338_v54 = vsel %vm337_vm4, %v336_v53, 1.0 }
 0x288   :  { %784 = vrcp.f32 %v338_v54 }
 0x292   :  { %v785_v58 = vpop.eup %784 }
 0x293   :  { %343 = vperm.xlu1 %783, %v785_v58  }
 0x2be   :  { %v324_v60 = vpop.f32.mrb[0].mxu1 }
 0x2bf   :  { %v328_v61 = vadd.f32 %v324_v60, %v241_v59  ;;  %v685_v62 = vpop.f32.mrb[1].mxu1 }
 0x2c1   :  { %329 = vst.msk [vmem:[#allocation3] sm:$0xff] %vm135_vm0, %v328_v61 }
 0x2c8   :  { %v340_v63 = vld [vmem:[#allocation3] sm:$0xff] }
 0x312   :  { %v344_v0 = vpop.permute.xlu1 %343 }
 0x313   :  { %v346_v2 = vmul.f32 %v344_v0, %v340_v63 }
 0x315   :  { %v351_v3 = vmul.f32 %v346_v2, %v137_v32  ;;  %v426_v5 = vmul.f32 %v346_v2, %v346_v2 }
 0x317   :  { %695 = vmatmul.mubr.msk.f32.vlgmr.msra.gmra.mrb[2].mxu0 %vm135_vm0, %v351_v3 }
 0x318   :  { %757 = vmatpush3.bf16.msra.mxu0 %v750_v46  ;;  %705 = vmatprep.mubr.msk.f32.mxu0 %vm1012_vm1, %v1013_v9 }
 0x319   :  { %758 = vmatprep.subr.bf16.mxu0 %v1011_v1 }
 0x31c   :  { %760 = vmatpush3.bf16.msra.mxu0 %v753_v57 }
 0x31d   :  { %761 = vmatprep.subr.bf16.mxu0 %v1011_v1 }
 0x31f   :  { %706 = vmatmul.mubr.msk.f32.vlgmr.msra.gmra.mrb[4].mxu0 %vm135_vm0, %v425_v4 }
 0x320   :  { %763 = vmatpush3.bf16.msra.mxu0 %v750_v46  ;;  %716 = vmatprep.mubr.msk.f32.mxu0 %vm1012_vm1, %v1013_v9 }
 0x321   :  { %764 = vmatprep.subr.bf16.mxu0 %v1011_v1 }
 0x324   :  { %766 = vmatpush3.bf16.msra.mxu0 %v753_v57 }
 0x327   :  { %717 = vmatmul.mubr.msk.f32.vlgmr.msra.gmra.mrb[6].mxu0 %vm135_vm0, %v426_v5 }
 0x3ea   :  { %v421_v6 = vpop.f32.mrb[2].mxu0 }
 0x3eb   :  { %v696_v7 = vpop.f32.mrb[3].mxu0 }
 0x3f2   :  { %v496_v8 = vpop.f32.mrb[4].mxu0 }
 0x3f3   :  { %v497_v10 = vadd.f32 1e-06, %v496_v8  ;;  %v707_v11 = vpop.f32.mrb[5].mxu0 }
 0x3f5   :  { %786 = vrsqrt.f32 %v497_v10 }
 0x3fa   :  { %v571_v12 = vpop.f32.mrb[6].mxu0 }
 0x3fb   :  { %v572_v13 = vadd.f32 1e-06, %v571_v12  ;;  %v718_v14 = vpop.f32.mrb[7].mxu0 }
 0x3fd   :  { %788 = vrsqrt.f32 %v572_v13 }
 0x3ff   :  { %v787_v15 = vpop.eup %786 }
 0x400   :  { %v501_v16 = vmul.f32 %v787_v15, %v421_v6 }
 0x407   :  { %v789_v9 = vpop.eup %788 }
 0x408   :  { %v576_v1 = vmul.f32 %v789_v9, %v501_v16 }
 0x40a   :  { %577 = vst [vmem:[#allocation18] sm:$0xff] %v576_v1 }
 0x40b   :  { %977 = shalt.err (!%p974_p12)
}
 0x40c   :  { %s978_s5 = scalar_lea.hbm %s1235_s8, 128 }
 0x40d   :  { %p979_p13 = scmp.ne.s32.totalorder %s1235_s8, %s978_s5  ;;  %p982_p0 = scmp.lt.u32.totalorder %s978_s5, %s1235_s8 }
 0x40f   :  { %p984_p1 = pnand %p982_p0, %p979_p13 }
 0x411   :  { %987 = shalt.err (!%p984_p1)
}
 0x412   :  { %587 = dma.vmem_to_hbm [thread:$0]  %s585_s25, 128, %s1235_s8, [#allocation6]  }
 0x413   :  { %998 = dma.done.wait [#allocation6], 128  }
 0x414   :  { %999 = vsyncadd [#allocation6], 4294967168 }
 0x415   :  { %591 = vsyncpa [#allocation5], 1 }
 0x416   :  { %592 = vsyncpa [#allocation8], 1 }
 0x417   :  { %593 = vsyncpa [#allocation11], 1 }
 0x418   :  { %594 = vsyncpa [#allocation14], 1 }
 0x419   :  { %595 = vsyncpa [#allocation17], 1 }
 0x41a   :  { %596 = vsyncpa [#allocation6], 1 }

</bundles_post_ra>
